<compile_context>
chip_gen: v7x
topology: tpu7x:2x2x1
jax: 0.10.0
libtpu: 0.0.40
codegen_flags: <defaults>
</compile_context>

<pallas_src>
import jax
import jax.numpy as jnp
from jax.experimental import pallas as pl
from jax.experimental.pallas import tpu as pltpu


def _identity_dma_kernel(x_hbm_ref, o_hbm_ref, copy_sem):
    # Single whole-array HBM->HBM async copy; data never transits VMEM/vregs.
    cp = pltpu.make_async_copy(x_hbm_ref, o_hbm_ref, copy_sem)
    cp.start()
    cp.wait()


def _identity_copy(x: jax.Array) -> jax.Array:
    """Materialize a copy of `x` in a distinct HBM buffer via one DMA."""
    return pl.pallas_call(
        _identity_dma_kernel,
        out_shape=jax.ShapeDtypeStruct(x.shape, x.dtype),
        in_specs=[pl.BlockSpec(memory_space=pl.ANY)],   # raw HBM ref, no auto-DMA
        out_specs=pl.BlockSpec(memory_space=pl.ANY),    # raw HBM ref, no auto-DMA
        scratch_shapes=[pltpu.SemaphoreType.DMA],
        compiler_params=pltpu.CompilerParams(has_side_effects=True),
    )(x)


def identity(x: jax.Array, *, copy: bool = False) -> jax.Array:
    """Forward pass of nn.Identity.

    Default: return `x` unchanged -- a no-op at trace time, which is the
    fastest correct implementation for every input size / TPU generation
    (kernel-launch overhead alone exceeds the copy cost for small tensors,
    and for large tensors it saves ~2x array-size of HBM bandwidth).

    copy=True: produce a distinct output buffer via a single HBM->HBM DMA
    Pallas kernel (for callers that semantically require a fresh buffer).
    """
    if not copy:
        return x
    return _identity_copy(x)


if __name__ == "__main__":
    key = jax.random.PRNGKey(0)
    # Small NCL input (1-D op convention): batch=2, channels=4, length=16.
    x = jax.random.normal(key, (2, 4, 16), dtype=jnp.float32)

    # Default (optimal) path: pure pass-through, no kernel launched.
    y_fast = identity(x)
    jax.block_until_ready(y_fast)
    assert y_fast.shape == x.shape and y_fast.dtype == x.dtype
    assert bool(jnp.all(y_fast == x))

    # Pallas path: HBM->HBM DMA copy into a distinct output buffer.
    y = identity(x, copy=True)
    jax.block_until_ready(y)
    assert y.shape == x.shape and y.dtype == x.dtype
    assert bool(jnp.all(y == x))

    # Exercise the kernel on a second dtype / lane-dense shape as well.
    x2 = jax.random.normal(jax.random.PRNGKey(1), (8, 256), dtype=jnp.bfloat16)
    y2 = identity(x2, copy=True)
    jax.block_until_ready(y2)
    assert y2.shape == x2.shape and y2.dtype == x2.dtype
    assert bool(jnp.all(y2 == x2))

    print("KERNEL_OK")
</pallas_src>

<mosaic_0001>
module attributes {stable_mosaic.version = 11 : i64} {
  func.func @_identity_dma_kernel(%arg0: memref<2x4x16xf32, #tpu.memory_space<any>>, %arg1: memref<2x4x16xf32, #tpu.memory_space<any>>, %arg2: memref<!tpu.dma_semaphore, #tpu.memory_space<semaphore_mem>>) attributes {dimension_semantics = [], scalar_prefetch = 0 : i64, scratch_operands = 1 : i64, tpu.core_type = #tpu.core_type<tc>} {
    tpu.enqueue_dma source(%arg0 : memref<2x4x16xf32, #tpu.memory_space<any>>) target(%arg1 : memref<2x4x16xf32, #tpu.memory_space<any>>) target_semaphore(%arg2 : memref<!tpu.dma_semaphore, #tpu.memory_space<semaphore_mem>>)
    tpu.wait_dma2 semaphore(%arg2 : memref<!tpu.dma_semaphore, #tpu.memory_space<semaphore_mem>>) src(%arg0 : memref<2x4x16xf32, #tpu.memory_space<any>>) dst(%arg1 : memref<2x4x16xf32, #tpu.memory_space<any>>)
    return
  }
}

</mosaic_0001>

<bundles_post_ra>
// kernel: tpu_custom_call.1
= control target key start
LH: loop header
LB: loop body
LE: loop exit
PB: predicated region body
PF: predicated region fallthrough
CT: control target
= control target key end

     0   :  { %s35_s6 = smov [#allocation2]   ;;  %s36_s7 = smov [#allocation3]   ;;  %s54_s0 = inlined_call_operand.hbm [shape: f32[2,4,16], index: 0, kind: input, shape index: {}]   ;;  %s55_s1 = inlined_call_operand.hbm [shape: f32[2,4,16], index: 1, kind: output, shape index: {}]  }
   0x1   :  { %s37_s8 = smov 0  }
   0x2   :  { %18 = dma.general %s54_s0, 128, %s55_s1, %s35_s6, %s36_s7, [#allocation4], %s37_s8, 0  }
   0x3   :  { %33 = dma.done.wait [#allocation2], 128 }
   0x4   :  { %34 = vsyncadd [#allocation2], 4294967168 }
   0x5   :  { %23 = vsyncmov [#allocation2] }
   0x8   :  { %s24_s13 = vpop.sfrf %23 }
   0x9   :  { %p29_p0 = scmp.ne.s32.totalorder %s24_s13, 0 }
   0xb   :  { %28 = shalt.err (%p29_p0)  }

</bundles_post_ra>
